<compile_context>
chip_gen: v7x
topology: tpu7x:2x2x1
jax: 0.10.0
libtpu: 0.0.40
codegen_flags: <defaults>
</compile_context>

<pallas_src>
import jax
import jax.numpy as jnp
from jax.experimental import pallas as pl
from jax.experimental.pallas import tpu as pltpu

_LANE = 128


def _round_up(n, m):
    return ((n + m - 1) // m) * m


def _linear_vpu_kernel(x1_ref, x2_ref, w_ref, b_ref, o1_ref, o2_ref):
    """y[n] = sum_k x[k, n] * w[k] + b for both inputs, computed on the VPU.

    x*_ref: (3, T) VMEM tiles, batch on the lane axis.
    w_ref:  (3,)   SMEM f32 scalars (torch weight row for out_features=1).
    b_ref:  (1,)   SMEM f32 scalar bias.
    o*_ref: (1, T) VMEM output tiles.
    """
    w0 = w_ref[0]
    w1 = w_ref[1]
    w2 = w_ref[2]
    b = b_ref[0]

    def _lin(x_ref, o_ref):
        # Read rows directly from the ref; accumulate in f32.
        y = (x_ref[0:1, :].astype(jnp.float32) * w0
             + x_ref[1:2, :].astype(jnp.float32) * w1
             + x_ref[2:3, :].astype(jnp.float32) * w2
             + b)
        o_ref[...] = y.astype(o_ref.dtype)

    _lin(x1_ref, o1_ref)
    _lin(x2_ref, o2_ref)


def non_standard_io_model(x, w, b, *, lane_tile=131072):
    """Apply the same Linear(3 -> 1) to x['data1'] and x['data2'].

    x:  dict with 'data1' (B, 3) and 'data2' (B, 3)
    w:  (1, 3) torch-layout weight
    b:  (1,)   bias
    returns dict with 'res1' (B, 1) and 'res2' (B, 1)
    """
    x1 = x["data1"]
    x2 = x["data2"]
    B = x1.shape[0]
    dtype = x1.dtype

    # --- tile / grid selection ------------------------------------------------
    # num_steps chosen so each step moves MiB-scale data; tile is balanced
    # (ceil(B / num_steps)) and rounded to a multiple of 128 lanes so padding
    # is < 128 lanes per step.  Large B (> lane_tile) => >= 2 "parallel" grid
    # steps, so v7x's two TensorCores both get a share.
    num_steps = max(1, -(-B // lane_tile))
    tile = _round_up(-(-B // num_steps), _LANE)
    n_pad = tile * num_steps

    # --- layout plumbing (outside the kernel) ---------------------------------
    # Batch on the lane axis; pad the lane axis up to num_steps * tile.
    x1t = x1.T  # (3, B)
    x2t = x2.T
    if n_pad > B:
        pad = n_pad - B
        x1t = jnp.pad(x1t, ((0, 0), (0, pad)))
        x2t = jnp.pad(x2t, ((0, 0), (0, pad)))

    w_vec = w.reshape(3).astype(jnp.float32)
    b_vec = b.reshape(1).astype(jnp.float32)

    # VMEM budget: each (3, tile) / (1, tile) f32 block pads sublanes to 8, so
    # double-buffered footprint ~= 2 bufs * (2 in + 2 out) * 8 * tile * 4 B.
    # Default tile=131072 -> ~32 MiB; 48 MiB limit leaves headroom and stays
    # under v7x's 64 MiB physical VMEM (v5e/v6e have 128 MiB).
    vmem_limit = 48 * 1024 * 1024

    out1, out2 = pl.pallas_call(
        _linear_vpu_kernel,
        out_shape=(
            jax.ShapeDtypeStruct((1, n_pad), dtype),
            jax.ShapeDtypeStruct((1, n_pad), dtype),
        ),
        grid=(num_steps,),
        in_specs=[
            pl.BlockSpec((3, tile), lambda i: (0, i)),              # data1.T (VMEM)
            pl.BlockSpec((3, tile), lambda i: (0, i)),              # data2.T (VMEM)
            pl.BlockSpec(memory_space=pltpu.MemorySpace.SMEM),      # weights
            pl.BlockSpec(memory_space=pltpu.MemorySpace.SMEM),      # bias
        ],
        out_specs=[
            pl.BlockSpec((1, tile), lambda i: (0, i)),
            pl.BlockSpec((1, tile), lambda i: (0, i)),
        ],
        compiler_params=pltpu.CompilerParams(
            dimension_semantics=("parallel",),
            vmem_limit_bytes=vmem_limit,
        ),
    )(x1t, x2t, w_vec, b_vec)

    res1 = out1[0, :B].reshape(B, 1)
    res2 = out2[0, :B].reshape(B, 1)
    return {"res1": res1, "res2": res2}


if __name__ == "__main__":
    key = jax.random.PRNGKey(0)
    k1, k2, kw, kb = jax.random.split(key, 4)

    # Deterministic parameters for Linear(3, 1) in torch layout.
    w_torch = jax.random.normal(kw, (1, 3), dtype=jnp.float32) * 0.5
    b = jax.random.normal(kb, (1,), dtype=jnp.float32) * 0.1

    # --- Small-batch case (single 128-lane padded block) ---
    B = 8
    data1 = jax.random.normal(k1, (B, 3), dtype=jnp.float32)
    data2 = jax.random.normal(k2, (B, 3), dtype=jnp.float32)

    out = non_standard_io_model({"data1": data1, "data2": data2}, w_torch, b)
    jax.block_until_ready(out)

    ref1 = data1 @ w_torch.T + b.reshape(1, 1)
    ref2 = data2 @ w_torch.T + b.reshape(1, 1)
    assert out["res1"].shape == (B, 1) and out["res2"].shape == (B, 1)
    assert jnp.allclose(out["res1"], ref1, atol=1e-5)
    assert jnp.allclose(out["res2"], ref2, atol=1e-5)

    # --- Larger, non-tile-divisible batch (exercises multi-step grid + padding) ---
    Bl = 4000
    kl1, kl2 = jax.random.split(jax.random.PRNGKey(1), 2)
    ldata1 = jax.random.normal(kl1, (Bl, 3), dtype=jnp.float32)
    ldata2 = jax.random.normal(kl2, (Bl, 3), dtype=jnp.float32)

    lout = non_standard_io_model(
        {"data1": ldata1, "data2": ldata2}, w_torch, b, lane_tile=1024)
    jax.block_until_ready(lout)

    lref1 = ldata1 @ w_torch.T + b.reshape(1, 1)
    lref2 = ldata2 @ w_torch.T + b.reshape(1, 1)
    assert lout["res1"].shape == (Bl, 1) and lout["res2"].shape == (Bl, 1)
    assert jnp.allclose(lout["res1"], lref1, atol=1e-5)
    assert jnp.allclose(lout["res2"], lref2, atol=1e-5)

    print("KERNEL_OK")
</pallas_src>

<mosaic_0001>
module attributes {stable_mosaic.version = 11 : i64} {
  func.func @_linear_vpu_kernel(%arg0: i32, %arg1: memref<3x128xf32, #tpu.memory_space<vmem>>, %arg2: memref<3x128xf32, #tpu.memory_space<vmem>>, %arg3: memref<3xf32, #tpu.memory_space<smem>>, %arg4: memref<1xf32, #tpu.memory_space<smem>>, %arg5: memref<1x128xf32, #tpu.memory_space<vmem>>, %arg6: memref<1x128xf32, #tpu.memory_space<vmem>>) attributes {dimension_semantics = [#tpu.dimension_semantics<parallel>], iteration_bounds = array<i64: 1>, scalar_prefetch = 0 : i64, scratch_operands = 0 : i64, tpu.core_type = #tpu.core_type<tc>, window_params = [{transform_indices = @transform_0, window_bounds = array<i64: 3, 128>}, {transform_indices = @transform_1, window_bounds = array<i64: 3, 128>}, {transform_indices = @transform_2, window_bounds = array<i64: 3>}, {transform_indices = @transform_3, window_bounds = array<i64: 1>}, {transform_indices = @transform_4, window_bounds = array<i64: 1, 128>}, {transform_indices = @transform_5, window_bounds = array<i64: 1, 128>}]} {
    %c0 = arith.constant 0 : index
    %0 = memref.load %arg3[%c0] : memref<3xf32, #tpu.memory_space<smem>>
    %c1 = arith.constant 1 : index
    %1 = memref.load %arg3[%c1] : memref<3xf32, #tpu.memory_space<smem>>
    %c2 = arith.constant 2 : index
    %2 = memref.load %arg3[%c2] : memref<3xf32, #tpu.memory_space<smem>>
    %c0_0 = arith.constant 0 : index
    %3 = memref.load %arg4[%c0_0] : memref<1xf32, #tpu.memory_space<smem>>
    %c0_1 = arith.constant 0 : index
    %c0_2 = arith.constant 0 : index
    %4 = vector.load %arg1[%c0_1, %c0_2] : memref<3x128xf32, #tpu.memory_space<vmem>>, vector<1x128xf32>
    %5 = vector.broadcast %0 : f32 to vector<1x128xf32>
    %6 = arith.mulf %4, %5 : vector<1x128xf32>
    %c1_3 = arith.constant 1 : index
    %c0_4 = arith.constant 0 : index
    %7 = vector.load %arg1[%c1_3, %c0_4] : memref<3x128xf32, #tpu.memory_space<vmem>>, vector<1x128xf32>
    %8 = vector.broadcast %1 : f32 to vector<1x128xf32>
    %9 = arith.mulf %7, %8 : vector<1x128xf32>
    %10 = arith.addf %6, %9 : vector<1x128xf32>
    %c2_5 = arith.constant 2 : index
    %c0_6 = arith.constant 0 : index
    %11 = vector.load %arg1[%c2_5, %c0_6] : memref<3x128xf32, #tpu.memory_space<vmem>>, vector<1x128xf32>
    %12 = vector.broadcast %2 : f32 to vector<1x128xf32>
    %13 = arith.mulf %11, %12 : vector<1x128xf32>
    %14 = arith.addf %10, %13 : vector<1x128xf32>
    %15 = vector.broadcast %3 : f32 to vector<1x128xf32>
    %16 = arith.addf %14, %15 : vector<1x128xf32>
    %c0_7 = arith.constant 0 : index
    %c0_8 = arith.constant 0 : index
    %17 = vector.load %arg5[%c0_7, %c0_8] : memref<1x128xf32, #tpu.memory_space<vmem>>, vector<1x128xf32>
    tpu.vector_store %arg5[%c0_7, %c0_8], %16 {strides = array<i32>} : memref<1x128xf32, #tpu.memory_space<vmem>>, vector<1x128xf32>,
    %c0_9 = arith.constant 0 : index
    %c0_10 = arith.constant 0 : index
    %18 = vector.load %arg2[%c0_9, %c0_10] : memref<3x128xf32, #tpu.memory_space<vmem>>, vector<1x128xf32>
    %19 = vector.broadcast %0 : f32 to vector<1x128xf32>
    %20 = arith.mulf %18, %19 : vector<1x128xf32>
    %c1_11 = arith.constant 1 : index
    %c0_12 = arith.constant 0 : index
    %21 = vector.load %arg2[%c1_11, %c0_12] : memref<3x128xf32, #tpu.memory_space<vmem>>, vector<1x128xf32>
    %22 = vector.broadcast %1 : f32 to vector<1x128xf32>
    %23 = arith.mulf %21, %22 : vector<1x128xf32>
    %24 = arith.addf %20, %23 : vector<1x128xf32>
    %c2_13 = arith.constant 2 : index
    %c0_14 = arith.constant 0 : index
    %25 = vector.load %arg2[%c2_13, %c0_14] : memref<3x128xf32, #tpu.memory_space<vmem>>, vector<1x128xf32>
    %26 = vector.broadcast %2 : f32 to vector<1x128xf32>
    %27 = arith.mulf %25, %26 : vector<1x128xf32>
    %28 = arith.addf %24, %27 : vector<1x128xf32>
    %29 = vector.broadcast %3 : f32 to vector<1x128xf32>
    %30 = arith.addf %28, %29 : vector<1x128xf32>
    %c0_15 = arith.constant 0 : index
    %c0_16 = arith.constant 0 : index
    %31 = vector.load %arg6[%c0_15, %c0_16] : memref<1x128xf32, #tpu.memory_space<vmem>>, vector<1x128xf32>
    tpu.vector_store %arg6[%c0_15, %c0_16], %30 {strides = array<i32>} : memref<1x128xf32, #tpu.memory_space<vmem>>, vector<1x128xf32>,
    return
  }
  func.func @transform_0(%arg0: i32) -> (i32, i32) {
    %c0_i32 = arith.constant 0 : i32
    %c0_i32_0 = arith.constant 0 : i32
    return %c0_i32, %arg0 : i32, i32
  }
  func.func @transform_1(%arg0: i32) -> (i32, i32) {
    %c0_i32 = arith.constant 0 : i32
    %c0_i32_0 = arith.constant 0 : i32
    return %c0_i32, %arg0 : i32, i32
  }
  func.func @transform_2(%arg0: i32) -> i32 {
    %c0_i32 = arith.constant 0 : i32
    %c0_i32_0 = arith.constant 0 : i32
    return %c0_i32 : i32
  }
  func.func @transform_3(%arg0: i32) -> i32 {
    %c0_i32 = arith.constant 0 : i32
    %c0_i32_0 = arith.constant 0 : i32
    return %c0_i32 : i32
  }
  func.func @transform_4(%arg0: i32) -> (i32, i32) {
    %c0_i32 = arith.constant 0 : i32
    %c0_i32_0 = arith.constant 0 : i32
    return %c0_i32, %arg0 : i32, i32
  }
  func.func @transform_5(%arg0: i32) -> (i32, i32) {
    %c0_i32 = arith.constant 0 : i32
    %c0_i32_0 = arith.constant 0 : i32
    return %c0_i32, %arg0 : i32, i32
  }
}

</mosaic_0001>

<bundles_post_ra>
// kernel: tpu_custom_call.1
= control target key start
LH: loop header
LB: loop body
LE: loop exit
PB: predicated region body
PF: predicated region fallthrough
CT: control target
= control target key end

     0   :  { %12 = vsyncpa [#allocation4], 0  ;;  %s290_s0 = inlined_call_operand.hbm [shape: f32[3,128], index: 0, kind: input, shape index: {}]   ;;  %s291_s1 = inlined_call_operand.vmem [shape: f32[3,128], index: 1, kind: input, shape index: {}]   ;;  %s292_s2 = inlined_call_operand.vmem [shape: f32[3], index: 2, kind: input, shape index: {}]   ;;  %s293_s3 = inlined_call_operand.<no memory space> [shape: f32[1], index: 3, kind: input, shape index: {}]   ;;  %s294_s4 = inlined_call_operand.hbm [shape: f32[1,128], index: 4, kind: output, shape index: {0}]   ;;  %s295_s5 = inlined_call_operand.hbm [shape: f32[1,128], index: 5, kind: output, shape index: {1}]  }
   0x1   :  { %13 = vsyncpa [#allocation6], 0 }
   0x2   :  { %14 = vsyncpa [#allocation5], 0 }
   0x3   :  { %15 = vsyncpa [#allocation10], 0  ;;  %s34_s20 = sshll.u32 %s292_s2, 4  ;;  %s197_s21 = smov [#allocation3]   ;;  %s35_s20 = int_to_ptr.vmem [resolvable:$true] %s34_s20 }
   0x4   :  { %s22_s22 = sshll.u32 %s197_s21, 4  ;;  %s111_s25 = scalar_lea.hbm %s290_s0, 64  ;;  %s23_s22 = int_to_ptr.vmem [resolvable:$true] %s22_s22 }
   0x5   :  { %p112_p0 = scmp.ne.s32.totalorder %s290_s0, %s111_s25  ;;  %p115_p1 = scmp.lt.u32.totalorder %s111_s25, %s290_s0 }
   0x7   :  { %p117_p2 = pnand %p115_p1, %p112_p0 }
   0x9   :  { %120 = shalt.err (!%p117_p2)
}
   0xa   :  { %s121_s30 = scalar_lea.vmem %s23_s22, 64  ;;  %p126_p4 = scmp.lt.s32.totalorder %s23_s22, %s23_s22 }
   0xb   :  { %p122_p3 = scmp.ne.s32.totalorder %s23_s22, %s121_s30  ;;  %p127_p5 = scmp.lt.s32.totalorder %s121_s30, %s121_s30 }
   0xd   :  { %p128_p6 = por %p127_p5, %p126_p4 }
   0xf   :  { %p129_p7 = pnand %p128_p6, %p122_p3 }
  0x11   :  { %132 = shalt.err (!%p129_p7)
}
  0x12   :  { %25 = dma.hbm_to_vmem [thread:$0]  %s290_s0, 64, %s23_s22, [#allocation4]  }
  0x13   :  { %s133_s7 = scalar_lea.vmem %s35_s20, 16  ;;  %p138_p9 = scmp.lt.s32.totalorder %s35_s20, %s35_s20 }
  0x14   :  { %p134_p8 = scmp.ne.s32.totalorder %s35_s20, %s133_s7  ;;  %p139_p10 = scmp.lt.s32.totalorder %s133_s7, %s133_s7 }
  0x16   :  { %p140_p11 = por %p139_p10, %p138_p9 }
  0x18   :  { %p141_p12 = pnand %p140_p11, %p134_p8 }
  0x1a   :  { %144 = shalt.err (!%p141_p12)
}
  0x1b   :  { %s198_s8 = smov [#allocation7]  }
  0x1c   :  { %37 = dma.vmem_to_smem %s35_s20, 16, %s198_s8, [#allocation6]  }
  0x1d   :  { %189 = dma.done.wait [#allocation4], 64  }
  0x1e   :  { %190 = vsyncadd [#allocation4], 4294967232 }
  0x1f   :  { %191 = dma.done.wait [#allocation6], 16  }
  0x20   :  { %192 = vsyncadd [#allocation6], 4294967280 }
  0x21   :  { %46 = sfence }
  0x22   :  { %s47_s9 = sld [smem:[#allocation7]]  ;;  %s105_s10 = sld [smem:[#allocation7 + $0x1]]  ;;  %v51_v0 = vld [vmem:[#allocation3] sm:$0x1]  ;;  %v54_v1 = vld [vmem:[#allocation3 + $0x1] sm:$0x1]  ;;  %v62_v16 = vstv %s293_s3 }
  0x23   :  { %s106_s11 = sld [smem:[#allocation7 + $0x2]]  ;;  %v65_v2 = vld [vmem:[%s291_s1] sm:$0x1]  ;;  %v58_v3 = vld [vmem:[#allocation3 + $0x2] sm:$0x1]  ;;  %s199_s19 = smov [#allocation8]  }
  0x24   :  { %v67_v4 = vld [vmem:[%s291_s1 + $0x1] sm:$0x1]  ;;  %v70_v5 = vld [vmem:[%s291_s1 + $0x2] sm:$0x1]  ;;  %s81_s20 = sshll.u32 %s199_s19, 4  ;;  %s200_s21 = smov [#allocation9]   ;;  %s82_s20 = int_to_ptr.vmem [resolvable:$true] %s81_s20 }
  0x25   :  { %s91_s1 = sshll.u32 %s200_s21, 4  ;;  %s145_s22 = scalar_lea.vmem %s82_s20, 16  ;;  %s258_s1 = int_to_ptr.vmem [resolvable:$true] %s91_s1 }
  0x26   :  { %p146_p13 = scmp.ne.s32.totalorder %s82_s20, %s145_s22  ;;  %s149_s23 = scalar_lea.vmem %s82_s20, 32 }
  0x27   :  { %p150_p0 = scmp.lt.s32.totalorder %s82_s20, %s82_s20  ;;  %p151_p1 = scmp.lt.s32.totalorder %s149_s23, %s145_s22 }
  0x28   :  { %v52_v6 = vstv %s47_s9  ;;  %v55_v7 = vstv %s105_s10 }
  0x29   :  { %v53_v8 = vmul.f32 %v52_v6, %v51_v0  ;;  %v56_v9 = vmul.f32 %v55_v7, %v54_v1  ;;  %v59_v10 = vstv %s106_s11  ;;  %v66_v11 = vmul.f32 %v65_v2, %v52_v6  ;;  %p152_p2 = por %p151_p1, %p150_p0 }
  0x2a   :  { %v60_v12 = vmul.f32 %v59_v10, %v58_v3  ;;  %v68_v13 = vmul.f32 %v67_v4, %v55_v7  ;;  %v71_v14 = vmul.f32 %v70_v5, %v59_v10 }
  0x2b   :  { %v57_v15 = vadd.f32 %v56_v9, %v53_v8  ;;  %p153_p3 = pnand %p152_p2, %p146_p13 }
  0x2c   :  { %v69_v17 = vadd.f32 %v68_v13, %v66_v11 }
  0x2d   :  { %v61_v18 = vadd.f32 %v60_v12, %v57_v15 }
  0x2e   :  { %v72_v19 = vadd.f32 %v71_v14, %v69_v17 }
  0x2f   :  { %v63_v20 = vadd.f32 %v62_v16, %v61_v18 }
  0x30   :  { %v73_v21 = vadd.f32 %v72_v19, %v62_v16 }
  0x31   :  { %64 = vst [vmem:[#allocation8] sm:$0x1] %v63_v20 }
  0x32   :  { %74 = vst [vmem:[#allocation9] sm:$0x1] %v73_v21 }
  0x33   :  { %156 = shalt.err (!%p153_p3)
}
  0x34   :  { %s157_s25 = scalar_lea.hbm %s294_s4, 16 }
  0x35   :  { %p158_p4 = scmp.ne.s32.totalorder %s294_s4, %s157_s25  ;;  %p161_p5 = scmp.lt.u32.totalorder %s157_s25, %s294_s4 }
  0x37   :  { %p163_p6 = pnand %p161_p5, %p158_p4 }
  0x39   :  { %166 = shalt.err (!%p163_p6)
}
  0x3a   :  { %84 = dma.vmem_to_hbm [thread:$0]  %s82_s20, 16, %s294_s4, [#allocation5]  }
  0x3b   :  { %s167_s6 = scalar_lea.vmem %s258_s1, 16  ;;  %s171_s7 = scalar_lea.vmem %s258_s1, 32 }
  0x3c   :  { %p168_p7 = scmp.ne.s32.totalorder %s258_s1, %s167_s6  ;;  %p172_p8 = scmp.lt.s32.totalorder %s258_s1, %s258_s1 }
  0x3d   :  { %p173_p9 = scmp.lt.s32.totalorder %s171_s7, %s167_s6 }
  0x3f   :  { %p174_p10 = por %p173_p9, %p172_p8 }
  0x41   :  { %p175_p11 = pnand %p174_p10, %p168_p7 }
  0x43   :  { %178 = shalt.err (!%p175_p11)
}
  0x44   :  { %s179_s10 = scalar_lea.hbm %s295_s5, 16 }
  0x45   :  { %p180_p12 = scmp.ne.s32.totalorder %s295_s5, %s179_s10  ;;  %p183_p13 = scmp.lt.u32.totalorder %s179_s10, %s295_s5 }
  0x47   :  { %p185_p0 = pnand %p183_p13, %p180_p12 }
  0x49   :  { %188 = shalt.err (!%p185_p0)
}
  0x4a   :  { %94 = dma.vmem_to_hbm [thread:$0]  %s258_s1, 16, %s295_s5, [#allocation10]  }
  0x4b   :  { %193 = dma.done.wait [#allocation5], 16  }
  0x4c   :  { %194 = vsyncadd [#allocation5], 4294967280 }
  0x4d   :  { %195 = dma.done.wait [#allocation10], 16  }
  0x4e   :  { %196 = vsyncadd [#allocation10], 4294967280 }
  0x4f   :  { %101 = vsyncpa [#allocation4], 1 }
  0x50   :  { %102 = vsyncpa [#allocation5], 1 }
  0x51   :  { %103 = vsyncpa [#allocation10], 1 }
  0x52   :  { %104 = vsyncpa [#allocation6], 1 }

</bundles_post_ra>
